<compile_context>
chip_gen: v6e
topology: v6e:2x2x1
jax: 0.10.0
libtpu: 0.0.40
codegen_flags: <defaults>
</compile_context>

<pallas_src>
import functools

import jax
import jax.numpy as jnp
from jax import lax
from jax.experimental import pallas as pl
from jax.experimental.pallas import tpu as pltpu

_LANE = 128          # lane width / MXU contraction alignment
_MAX_COL_TILE = 128  # max anchors (columns of cos) processed per grid step


def _round_up(v, m):
    return (v + m - 1) // m * m


def _czangleproto_kernel(n, w_ref, pos_ref, xa_ref, loss_ref, prec_ref,
                         pos_scr, best_val, best_idx, loss_acc):
    """n is the static (Python int) number of valid speakers."""
    j = pl.program_id(0)
    last = pl.num_programs(0) - 1
    tn = xa_ref.shape[0]                  # columns (anchors) handled this step
    np_, dp = pos_scr.shape               # padded N, padded D
    eps = 1e-8                            # F.cosine_similarity eps
    inv_n = 1.0 / n

    # ---- step 0: normalize positives once, fold in w, init accumulators ----
    @pl.when(j == 0)
    def _():
        pos = pos_ref[...].astype(jnp.float32)                          # (Np, Dp)
        inv = lax.rsqrt(jnp.maximum(
            jnp.sum(pos * pos, axis=-1, keepdims=True), eps * eps))     # 1/max(|p|,eps)
        pos_scr[...] = pos * (inv * w_ref[0])    # fold w: N*D mul instead of N^2
        best_val[...] = jnp.full_like(best_val, -jnp.inf)
        best_idx[...] = jnp.zeros_like(best_idx)
        loss_acc[0] = 0.0

    # ---- this step's anchors: mean over the M-1 anchor views, normalize ----
    xa = xa_ref[...].astype(jnp.float32)                                # (tn, M-1, Dp)
    anc = jnp.mean(xa, axis=1)                                          # (tn, Dp)
    inv_a = lax.rsqrt(jnp.maximum(
        jnp.sum(anc * anc, axis=-1, keepdims=True), eps * eps))
    anc_n = anc * inv_a                                                 # (tn, Dp)

    pos_nw = pos_scr[...]                                               # (Np, Dp)

    # cos block, already scaled by w.  Contract over D on both operands so no
    # explicit transpose of anc_n is materialized; the bias b cancels exactly
    # in (lse - diag) and does not change the argmax, so it is omitted.
    cos = lax.dot_general(pos_nw, anc_n,
                          dimension_numbers=(((1,), (1,)), ((), ())),
                          preferred_element_type=jnp.float32)           # (Np, tn)

    col0 = j * tn
    row_ids = lax.broadcasted_iota(jnp.int32, (np_, tn), 0)
    col_ids = lax.broadcasted_iota(jnp.int32, (np_, tn), 1) + col0      # global cols
    lse_mask = (row_ids == col_ids) | (row_ids >= n)                    # diag + padded rows

    # Column-wise logsumexp over off-diagonal entries (padded rows masked out).
    neg = jnp.where(lse_mask, -jnp.inf, cos)
    mx = jnp.max(neg, axis=0, keepdims=True)                            # (1, tn)
    lse = mx + jnp.log(jnp.sum(jnp.exp(neg - mx), axis=0, keepdims=True))

    # Diagonal computed directly as a row-wise dot (N*D work, no N^2 select).
    pos_rows = pos_scr[pl.ds(pl.multiple_of(col0, tn), tn), :]          # (tn, Dp)
    diag = jnp.sum(pos_rows * anc_n, axis=-1)[None, :]                  # (1, tn)

    col_valid = (lax.broadcasted_iota(jnp.int32, (1, tn), 1) + col0) < n
    loss_acc[0] += jnp.sum(jnp.where(col_valid, lse - diag, 0.0))

    # Online per-row argmax across column tiles (top-1 accuracy, first-max tie
    # rule like torch.argmax/topk: first within a tile, strict '>' across tiles).
    cos_am = jnp.where(col_ids < n, cos, -jnp.inf)
    tile_max = jnp.max(cos_am, axis=1, keepdims=True)                   # (Np, 1)
    tile_arg = jnp.min(jnp.where(cos_am >= tile_max, col_ids, jnp.int32(2 ** 30)),
                       axis=1, keepdims=True)                           # (Np, 1)
    better = tile_max > best_val[...]
    best_val[...] = jnp.where(better, tile_max, best_val[...])
    best_idx[...] = jnp.where(better, tile_arg, best_idx[...])

    # ---- last step: finalize scalars ----
    @pl.when(j == last)
    def _():
        loss_ref[0, 0] = loss_acc[0] * inv_n
        rows = lax.broadcasted_iota(jnp.int32, (np_, 1), 0)
        correct = jnp.where((best_idx[...] == rows) & (rows < n), 1.0, 0.0)
        prec_ref[0, 0] = jnp.sum(correct) * (100.0 * inv_n)


def czangleproto_loss(x, init_w=10.0, init_b=-5.0, *, max_col_tile=_MAX_COL_TILE):
    """x: (N, M, D) float with M >= 2, N >= 2.  Returns (nloss, prec1) scalars."""
    n, m, d = x.shape
    assert m >= 2, "need at least 2 utterances per speaker"
    assert n >= 2, "off-diagonal logsumexp needs at least 2 speakers"
    del init_b  # cancels exactly in (logsumexp - diag); does not affect argmax

    dp = _round_up(d, _LANE)                      # full lane / MXU utilization
    col_tile = min(max_col_tile, _round_up(n, 8))  # adaptive column tile
    np_ = _round_up(n, col_tile)                  # padded rows/cols masked in-kernel
    mviews = m - 1

    # Data plumbing only: split positive view / anchor views and zero-pad (exact).
    pos = jnp.pad(x[:, 0, :], ((0, np_ - n), (0, dp - d)))
    anchors = jnp.pad(x[:, 1:, :], ((0, np_ - n), (0, 0), (0, dp - d)))
    w_arr = jnp.asarray([init_w], dtype=jnp.float32)

    # VMEM budget: resident positives (input + f32 scratch), double-buffered
    # anchor tile, a few (Np, tn) f32 temporaries, argmax scratch.
    xb = x.dtype.itemsize
    est = (np_ * dp * xb + np_ * dp * 4
           + 2 * col_tile * mviews * dp * xb
           + 8 * np_ * col_tile * 4 + 16 * np_) + (1 << 20)
    vmem_limit = int(min(max(2 * est, 32 << 20), 48 << 20))  # headroom on v7x

    kernel = functools.partial(_czangleproto_kernel, n)

    loss, prec1 = pl.pallas_call(
        kernel,
        out_shape=(jax.ShapeDtypeStruct((1, 1), jnp.float32),
                   jax.ShapeDtypeStruct((1, 1), jnp.float32)),
        grid_spec=pltpu.PrefetchScalarGridSpec(
            num_scalar_prefetch=0,
            grid=(np_ // col_tile,),                         # anchor/column tiles
            in_specs=[
                pl.BlockSpec((1,), lambda j: (0,),
                             memory_space=pltpu.MemorySpace.SMEM),      # w
                pl.BlockSpec((np_, dp), lambda j: (0, 0)),              # positives (resident)
                pl.BlockSpec((col_tile, mviews, dp),
                             lambda j: (j, 0, 0)),                      # anchor tile (pipelined)
            ],
            out_specs=(
                pl.BlockSpec((1, 1), lambda j: (0, 0),
                             memory_space=pltpu.MemorySpace.SMEM),      # nloss
                pl.BlockSpec((1, 1), lambda j: (0, 0),
                             memory_space=pltpu.MemorySpace.SMEM),      # prec1
            ),
            scratch_shapes=[
                pltpu.VMEM((np_, dp), jnp.float32),   # normalized, w-scaled positives
                pltpu.VMEM((np_, 1), jnp.float32),    # running per-row max
                pltpu.VMEM((np_, 1), jnp.int32),      # running per-row argmax
                pltpu.SMEM((1,), jnp.float32),        # loss accumulator
            ],
        ),
        compiler_params=pltpu.CompilerParams(
            dimension_semantics=("arbitrary",),       # grid axis carries accumulators
            vmem_limit_bytes=vmem_limit,
        ),
    )(w_arr, pos, anchors)
    return loss[0, 0], prec1[0, 0]


def _reference(x, init_w, init_b):
    """Pure-JAX reference matching the PyTorch forward."""
    out_anchor = jnp.mean(x[:, 1:, :], axis=1)
    out_positive = x[:, 0, :]
    eps = 1e-8
    pn = out_positive / jnp.maximum(
        jnp.linalg.norm(out_positive, axis=-1, keepdims=True), eps)
    an = out_anchor / jnp.maximum(
        jnp.linalg.norm(out_anchor, axis=-1, keepdims=True), eps)
    cos = pn @ an.T * init_w + init_b
    n = x.shape[0]
    neg = jnp.where(jnp.eye(n, dtype=bool), -jnp.inf, cos)
    lse = jax.scipy.special.logsumexp(neg, axis=0)
    loss = jnp.mean(lse - jnp.diag(cos))
    prec = 100.0 * jnp.mean(
        (jnp.argmax(cos, axis=1) == jnp.arange(n)).astype(jnp.float32))
    return loss, prec


if __name__ == "__main__":
    key = jax.random.PRNGKey(0)

    # Small single-tile case: N speakers, M utterances (M >= 2), D-dim embeddings.
    N, M, D = 8, 3, 32
    x = jax.random.normal(key, (N, M, D), dtype=jnp.float32)
    nloss, prec1 = czangleproto_loss(x, init_w=10.0, init_b=-5.0)
    jax.block_until_ready((nloss, prec1))
    ref_loss, ref_prec = _reference(x, 10.0, -5.0)
    assert jnp.allclose(nloss, ref_loss, rtol=2e-3, atol=2e-3), (nloss, ref_loss)
    assert jnp.allclose(prec1, ref_prec, rtol=1e-3, atol=1e-3), (prec1, ref_prec)

    # Multi-tile case (two 128-wide column tiles; padded rows, cols and D).
    x2 = jax.random.normal(jax.random.fold_in(key, 1), (200, 2, 100),
                           dtype=jnp.float32)
    nloss2, prec2 = czangleproto_loss(x2, init_w=10.0, init_b=-5.0)
    jax.block_until_ready((nloss2, prec2))
    ref_loss2, ref_prec2 = _reference(x2, 10.0, -5.0)
    assert jnp.allclose(nloss2, ref_loss2, rtol=2e-3, atol=2e-3), (nloss2, ref_loss2)
    assert jnp.allclose(prec2, ref_prec2, rtol=1e-3, atol=1e-3), (prec2, ref_prec2)

    print("KERNEL_OK")
</pallas_src>

<mosaic_0001>
module attributes {stable_mosaic.version = 11 : i64} {
  func.func @_czangleproto_kernel(%arg0: i32, %arg1: memref<1xf32, #tpu.memory_space<smem>>, %arg2: memref<8x128xf32, #tpu.memory_space<vmem>>, %arg3: memref<8x2x128xf32, #tpu.memory_space<vmem>>, %arg4: memref<1x1xf32, #tpu.memory_space<smem>>, %arg5: memref<1x1xf32, #tpu.memory_space<smem>>, %arg6: memref<8x128xf32, #tpu.memory_space<vmem>>, %arg7: memref<8x1xf32, #tpu.memory_space<vmem>>, %arg8: memref<8x1xi32, #tpu.memory_space<vmem>>, %arg9: memref<1xf32, #tpu.memory_space<smem>>) attributes {dimension_semantics = [#tpu.dimension_semantics<arbitrary>], iteration_bounds = array<i64: 1>, scalar_prefetch = 0 : i64, scratch_operands = 4 : i64, tpu.core_type = #tpu.core_type<tc>, window_params = [{transform_indices = @transform_0, window_bounds = array<i64: 1>}, {pipeline_mode = #tpu.pipeline_mode<synchronous>, transform_indices = @transform_1, window_bounds = array<i64: 8, 128>}, {transform_indices = @transform_2, window_bounds = array<i64: 8, 2, 128>}, {transform_indices = @transform_3, window_bounds = array<i64: 1, 1>}, {transform_indices = @transform_4, window_bounds = array<i64: 1, 1>}]} {
    %c0_i32 = arith.constant 0 : i32
    %0 = arith.cmpi eq, %arg0, %c0_i32 : i32
    %1 = arith.extui %0 : i1 to i32
    %c0_i32_0 = arith.constant 0 : i32
    %2 = arith.cmpi ne, %1, %c0_i32_0 : i32
    scf.if %2 {
      %c0_36 = arith.constant 0 : index
      %c0_37 = arith.constant 0 : index
      %81 = vector.load %arg2[%c0_36, %c0_37] : memref<8x128xf32, #tpu.memory_space<vmem>>, vector<8x128xf32>
      %82 = arith.mulf %81, %81 : vector<8x128xf32>
      %cst_38 = arith.constant dense<0.000000e+00> : vector<8xf32>
      %83 = vector.multi_reduction <add>, %82, %cst_38 [1] : vector<8x128xf32> to vector<8xf32>
      %84 = vector.shape_cast %83 : vector<8xf32> to vector<8x1xf32>
      %cst_39 = arith.constant 1.000000e-16 : f32
      %85 = vector.broadcast %cst_39 : f32 to vector<8x1xf32>
      %86 = arith.maximumf %84, %85 : vector<8x1xf32>
      %87 = math.rsqrt %86 : vector<8x1xf32>
      %c0_40 = arith.constant 0 : index
      %88 = memref.load %arg1[%c0_40] : memref<1xf32, #tpu.memory_space<smem>>
      %89 = vector.broadcast %88 : f32 to vector<8x1xf32>
      %90 = arith.mulf %87, %89 : vector<8x1xf32>
      %91 = vector.broadcast %90 : vector<8x1xf32> to vector<8x128xf32>
      %92 = arith.mulf %81, %91 : vector<8x128xf32>
      %c0_41 = arith.constant 0 : index
      %c0_42 = arith.constant 0 : index
      %93 = vector.load %arg6[%c0_41, %c0_42] : memref<8x128xf32, #tpu.memory_space<vmem>>, vector<8x128xf32>
      tpu.vector_store %arg6[%c0_41, %c0_42], %92 {strides = array<i32>} : memref<8x128xf32, #tpu.memory_space<vmem>>, vector<8x128xf32>,
      %cst_43 = arith.constant 0xFF800000 : f32
      %94 = vector.broadcast %cst_43 : f32 to vector<8x1xf32>
      %c0_44 = arith.constant 0 : index
      %c0_45 = arith.constant 0 : index
      %95 = vector.load %arg7[%c0_44, %c0_45] : memref<8x1xf32, #tpu.memory_space<vmem>>, vector<8x1xf32>
      tpu.vector_store %arg7[%c0_44, %c0_45], %94 {strides = array<i32>} : memref<8x1xf32, #tpu.memory_space<vmem>>, vector<8x1xf32>,
      %c0_i32_46 = arith.constant 0 : i32
      %96 = vector.broadcast %c0_i32_46 : i32 to vector<8x1xi32>
      %c0_47 = arith.constant 0 : index
      %c0_48 = arith.constant 0 : index
      %97 = vector.load %arg8[%c0_47, %c0_48] : memref<8x1xi32, #tpu.memory_space<vmem>>, vector<8x1xi32>
      tpu.vector_store %arg8[%c0_47, %c0_48], %96 {strides = array<i32>} : memref<8x1xi32, #tpu.memory_space<vmem>>, vector<8x1xi32>,
      %cst_49 = arith.constant 0.000000e+00 : f32
      %c0_50 = arith.constant 0 : index
      %98 = memref.load %arg9[%c0_50] : memref<1xf32, #tpu.memory_space<smem>>
      memref.store %cst_49, %arg9[%c0_50] : memref<1xf32, #tpu.memory_space<smem>>
    } else {
    }
    %c0 = arith.constant 0 : index
    %c0_1 = arith.constant 0 : index
    %c0_2 = arith.constant 0 : index
    %3 = vector.load %arg3[%c0, %c0_1, %c0_2] : memref<8x2x128xf32, #tpu.memory_space<vmem>>, vector<8x2x128xf32>
    %cst = arith.constant dense<0.000000e+00> : vector<8x128xf32>
    %4 = vector.multi_reduction <add>, %3, %cst [1] : vector<8x2x128xf32> to vector<8x128xf32>
    %cst_3 = arith.constant 2.000000e+00 : f32
    %5 = vector.broadcast %cst_3 : f32 to vector<8x128xf32>
    %6 = arith.divf %4, %5 : vector<8x128xf32>
    %7 = arith.mulf %6, %6 : vector<8x128xf32>
    %cst_4 = arith.constant dense<0.000000e+00> : vector<8xf32>
    %8 = vector.multi_reduction <add>, %7, %cst_4 [1] : vector<8x128xf32> to vector<8xf32>
    %9 = vector.shape_cast %8 : vector<8xf32> to vector<8x1xf32>
    %cst_5 = arith.constant 1.000000e-16 : f32
    %10 = vector.broadcast %cst_5 : f32 to vector<8x1xf32>
    %11 = arith.maximumf %9, %10 : vector<8x1xf32>
    %12 = math.rsqrt %11 : vector<8x1xf32>
    %13 = vector.broadcast %12 : vector<8x1xf32> to vector<8x128xf32>
    %14 = arith.mulf %6, %13 : vector<8x128xf32>
    %c0_6 = arith.constant 0 : index
    %c0_7 = arith.constant 0 : index
    %15 = vector.load %arg6[%c0_6, %c0_7] : memref<8x128xf32, #tpu.memory_space<vmem>>, vector<8x128xf32>
    %cst_8 = arith.constant dense<0.000000e+00> : vector<8x8xf32>
    %16 = tpu.matmul %15, %14, %cst_8 {dimension_numbers = #tpu.dot_dimension_numbers<[1], [1], [0], [0], [0, 0, 1, 0], [], []>} : vector<8x128xf32>, vector<8x128xf32>, vector<8x8xf32> -> vector<8x8xf32>
    %c8_i32 = arith.constant 8 : i32
    %17 = arith.muli %arg0, %c8_i32 : i32
    %18 = tpu.iota {dimensions = array<i32: 0>} : vector<8x8xi32>
    %19 = tpu.iota {dimensions = array<i32: 1>} : vector<8x8xi32>
    %20 = vector.broadcast %17 : i32 to vector<8x8xi32>
    %21 = arith.addi %19, %20 : vector<8x8xi32>
    %22 = arith.cmpi eq, %18, %21 : vector<8x8xi32>
    %c8_i32_9 = arith.constant 8 : i32
    %23 = vector.broadcast %c8_i32_9 : i32 to vector<8x8xi32>
    %24 = arith.cmpi sge, %18, %23 : vector<8x8xi32>
    %25 = arith.ori %22, %24 : vector<8x8xi1>
    %cst_10 = arith.constant 0xFF800000 : f32
    %26 = vector.broadcast %cst_10 : f32 to vector<8x8xf32>
    %27 = arith.select %25, %26, %16 : vector<8x8xi1>, vector<8x8xf32>
    %cst_11 = arith.constant dense<0xFF800000> : vector<8xf32>
    %28 = vector.multi_reduction <maximumf>, %27, %cst_11 [0] : vector<8x8xf32> to vector<8xf32>
    %29 = vector.shape_cast %28 : vector<8xf32> to vector<1x8xf32>
    %30 = vector.broadcast %29 : vector<1x8xf32> to vector<8x8xf32>
    %31 = arith.subf %27, %30 : vector<8x8xf32>
    %32 = math.exp %31 : vector<8x8xf32>
    %cst_12 = arith.constant dense<0.000000e+00> : vector<8xf32>
    %33 = vector.multi_reduction <add>, %32, %cst_12 [0] : vector<8x8xf32> to vector<8xf32>
    %34 = vector.shape_cast %33 : vector<8xf32> to vector<1x8xf32>
    %35 = math.log %34 : vector<1x8xf32>
    %36 = arith.addf %29, %35 : vector<1x8xf32>
    %37 = tpu.assume_multiple %17, 8 : i32
    %38 = arith.index_cast %37 : i32 to index
    %c0_13 = arith.constant 0 : index
    %39 = vector.load %arg6[%38, %c0_13] : memref<8x128xf32, #tpu.memory_space<vmem>>, vector<8x128xf32>
    %40 = arith.mulf %39, %14 : vector<8x128xf32>
    %cst_14 = arith.constant dense<0.000000e+00> : vector<8xf32>
    %41 = vector.multi_reduction <add>, %40, %cst_14 [1] : vector<8x128xf32> to vector<8xf32>
    %42 = vector.shape_cast %41 : vector<8xf32> to vector<1x8xf32>
    %43 = tpu.iota {dimensions = array<i32: 1>} : vector<1x8xi32>
    %44 = vector.broadcast %17 : i32 to vector<1x8xi32>
    %45 = arith.addi %43, %44 : vector<1x8xi32>
    %c8_i32_15 = arith.constant 8 : i32
    %46 = vector.broadcast %c8_i32_15 : i32 to vector<1x8xi32>
    %47 = arith.cmpi slt, %45, %46 : vector<1x8xi32>
    %c0_16 = arith.constant 0 : index
    %48 = memref.load %arg9[%c0_16] : memref<1xf32, #tpu.memory_space<smem>>
    %49 = arith.subf %36, %42 : vector<1x8xf32>
    %cst_17 = arith.constant 0.000000e+00 : f32
    %50 = vector.broadcast %cst_17 : f32 to vector<1x8xf32>
    %51 = arith.select %47, %49, %50 : vector<1x8xi1>, vector<1x8xf32>
    %52 = vector.shape_cast %51 : vector<1x8xf32> to vector<1x1x8xf32>
    %cst_18 = arith.constant dense<0.000000e+00> : vector<1xf32>
    %53 = vector.multi_reduction <add>, %52, %cst_18 [1, 2] : vector<1x1x8xf32> to vector<1xf32>
    %54 = vector.shape_cast %53 : vector<1xf32> to vector<1x1x1xf32>
    %55 = vector.extract %54[0, 0, 0] : f32 from vector<1x1x1xf32>
    %56 = arith.addf %48, %55 : f32
    %c0_19 = arith.constant 0 : index
    %57 = memref.load %arg9[%c0_19] : memref<1xf32, #tpu.memory_space<smem>>
    memref.store %56, %arg9[%c0_19] : memref<1xf32, #tpu.memory_space<smem>>
    %c8_i32_20 = arith.constant 8 : i32
    %58 = vector.broadcast %c8_i32_20 : i32 to vector<8x8xi32>
    %59 = arith.cmpi slt, %21, %58 : vector<8x8xi32>
    %cst_21 = arith.constant 0xFF800000 : f32
    %60 = vector.broadcast %cst_21 : f32 to vector<8x8xf32>
    %61 = arith.select %59, %16, %60 : vector<8x8xi1>, vector<8x8xf32>
    %cst_22 = arith.constant dense<0xFF800000> : vector<8xf32>
    %62 = vector.multi_reduction <maximumf>, %61, %cst_22 [1] : vector<8x8xf32> to vector<8xf32>
    %63 = vector.shape_cast %62 : vector<8xf32> to vector<8x1xf32>
    %64 = vector.broadcast %63 : vector<8x1xf32> to vector<8x8xf32>
    %65 = arith.cmpf oge, %61, %64 : vector<8x8xf32>
    %c1073741824_i32 = arith.constant 1073741824 : i32
    %66 = vector.broadcast %c1073741824_i32 : i32 to vector<8x8xi32>
    %67 = arith.select %65, %21, %66 : vector<8x8xi1>, vector<8x8xi32>
    %cst_23 = arith.constant dense<2147483647> : vector<8xi32>
    %68 = vector.multi_reduction <minsi>, %67, %cst_23 [1] : vector<8x8xi32> to vector<8xi32>
    %69 = vector.shape_cast %68 : vector<8xi32> to vector<8x1xi32>
    %c0_24 = arith.constant 0 : index
    %c0_25 = arith.constant 0 : index
    %70 = vector.load %arg7[%c0_24, %c0_25] : memref<8x1xf32, #tpu.memory_space<vmem>>, vector<8x1xf32>
    %71 = arith.cmpf ogt, %63, %70 : vector<8x1xf32>
    %c0_26 = arith.constant 0 : index
    %c0_27 = arith.constant 0 : index
    %72 = vector.load %arg7[%c0_26, %c0_27] : memref<8x1xf32, #tpu.memory_space<vmem>>, vector<8x1xf32>
    %73 = arith.select %71, %63, %72 : vector<8x1xi1>, vector<8x1xf32>
    %c0_28 = arith.constant 0 : index
    %c0_29 = arith.constant 0 : index
    %74 = vector.load %arg7[%c0_28, %c0_29] : memref<8x1xf32, #tpu.memory_space<vmem>>, vector<8x1xf32>
    tpu.vector_store %arg7[%c0_28, %c0_29], %73 {strides = array<i32>} : memref<8x1xf32, #tpu.memory_space<vmem>>, vector<8x1xf32>,
    %c0_30 = arith.constant 0 : index
    %c0_31 = arith.constant 0 : index
    %75 = vector.load %arg8[%c0_30, %c0_31] : memref<8x1xi32, #tpu.memory_space<vmem>>, vector<8x1xi32>
    %76 = arith.select %71, %69, %75 : vector<8x1xi1>, vector<8x1xi32>
    %c0_32 = arith.constant 0 : index
    %c0_33 = arith.constant 0 : index
    %77 = vector.load %arg8[%c0_32, %c0_33] : memref<8x1xi32, #tpu.memory_space<vmem>>, vector<8x1xi32>
    tpu.vector_store %arg8[%c0_32, %c0_33], %76 {strides = array<i32>} : memref<8x1xi32, #tpu.memory_space<vmem>>, vector<8x1xi32>,
    %c0_i32_34 = arith.constant 0 : i32
    %78 = arith.cmpi eq, %arg0, %c0_i32_34 : i32
    %79 = arith.extui %78 : i1 to i32
    %c0_i32_35 = arith.constant 0 : i32
    %80 = arith.cmpi ne, %79, %c0_i32_35 : i32
    scf.if %80 {
      %c0_36 = arith.constant 0 : index
      %81 = memref.load %arg9[%c0_36] : memref<1xf32, #tpu.memory_space<smem>>
      %cst_37 = arith.constant 1.250000e-01 : f32
      %82 = arith.mulf %81, %cst_37 : f32
      %c0_38 = arith.constant 0 : index
      %c0_39 = arith.constant 0 : index
      %83 = memref.load %arg4[%c0_38, %c0_39] : memref<1x1xf32, #tpu.memory_space<smem>>
      memref.store %82, %arg4[%c0_38, %c0_39] : memref<1x1xf32, #tpu.memory_space<smem>>
      %84 = tpu.iota {dimensions = array<i32: 0>} : vector<8x1xi32>
      %c0_40 = arith.constant 0 : index
      %c0_41 = arith.constant 0 : index
      %85 = vector.load %arg8[%c0_40, %c0_41] : memref<8x1xi32, #tpu.memory_space<vmem>>, vector<8x1xi32>
      %86 = arith.cmpi eq, %85, %84 : vector<8x1xi32>
      %c8_i32_42 = arith.constant 8 : i32
      %87 = vector.broadcast %c8_i32_42 : i32 to vector<8x1xi32>
      %88 = arith.cmpi slt, %84, %87 : vector<8x1xi32>
      %89 = arith.andi %86, %88 : vector<8x1xi1>
      %cst_43 = arith.constant 1.000000e+00 : f32
      %cst_44 = arith.constant 0.000000e+00 : f32
      %90 = vector.broadcast %cst_43 : f32 to vector<8x1xf32>
      %91 = vector.broadcast %cst_44 : f32 to vector<8x1xf32>
      %92 = arith.select %89, %90, %91 : vector<8x1xi1>, vector<8x1xf32>
      %93 = vector.shape_cast %92 : vector<8x1xf32> to vector<1x8x1xf32>
      %cst_45 = arith.constant dense<0.000000e+00> : vector<1xf32>
      %94 = vector.multi_reduction <add>, %93, %cst_45 [1, 2] : vector<1x8x1xf32> to vector<1xf32>
      %95 = vector.shape_cast %94 : vector<1xf32> to vector<1x1x1xf32>
      %96 = vector.extract %95[0, 0, 0] : f32 from vector<1x1x1xf32>
      %cst_46 = arith.constant 1.250000e+01 : f32
      %97 = arith.mulf %96, %cst_46 : f32
      %c0_47 = arith.constant 0 : index
      %c0_48 = arith.constant 0 : index
      %98 = memref.load %arg5[%c0_47, %c0_48] : memref<1x1xf32, #tpu.memory_space<smem>>
      memref.store %97, %arg5[%c0_47, %c0_48] : memref<1x1xf32, #tpu.memory_space<smem>>
    } else {
    }
    return
  }
  func.func @transform_0(%arg0: i32) -> i32 {
    %c0_i32 = arith.constant 0 : i32
    %c0_i32_0 = arith.constant 0 : i32
    return %c0_i32 : i32
  }
  func.func @transform_1(%arg0: i32) -> (i32, i32) {
    %c0_i32 = arith.constant 0 : i32
    %c0_i32_0 = arith.constant 0 : i32
    %c0_i32_1 = arith.constant 0 : i32
    return %c0_i32, %c0_i32_0 : i32, i32
  }
  func.func @transform_2(%arg0: i32) -> (i32, i32, i32) {
    %c0_i32 = arith.constant 0 : i32
    %c0_i32_0 = arith.constant 0 : i32
    %c0_i32_1 = arith.constant 0 : i32
    return %arg0, %c0_i32, %c0_i32_0 : i32, i32, i32
  }
  func.func @transform_3(%arg0: i32) -> (i32, i32) {
    %c0_i32 = arith.constant 0 : i32
    %c0_i32_0 = arith.constant 0 : i32
    %c0_i32_1 = arith.constant 0 : i32
    return %c0_i32, %c0_i32_0 : i32, i32
  }
  func.func @transform_4(%arg0: i32) -> (i32, i32) {
    %c0_i32 = arith.constant 0 : i32
    %c0_i32_0 = arith.constant 0 : i32
    %c0_i32_1 = arith.constant 0 : i32
    return %c0_i32, %c0_i32_0 : i32, i32
  }
}

</mosaic_0001>

<bundles_post_ra>
// kernel: tpu_custom_call.1
= control target key start
LH: loop header
LB: loop body
LE: loop exit
PB: predicated region body
PF: predicated region fallthrough
CT: control target
= control target key end

     0   :  { %11 = vsyncpa [#allocation8], 0  ;;  %s615_s0 = inlined_call_operand.<no memory space> [shape: f32[1], index: 0, kind: input, shape index: {}]   ;;  %s616_s1 = inlined_call_operand.hbm [shape: f32[8,128], index: 1, kind: input, shape index: {}]   ;;  %s617_s2 = inlined_call_operand.hbm [shape: f32[8,2,128], index: 2, kind: input, shape index: {}]   ;;  %s618_s3 = inlined_call_operand.hbm [shape: f32[1,1], index: 3, kind: output, shape index: {0}]   ;;  %s619_s4 = inlined_call_operand.hbm [shape: f32[1,1], index: 4, kind: output, shape index: {1}]  }
   0x1   :  { %12 = vsyncpa [#allocation11], 0 }
   0x2   :  { %13 = vsyncpa [#allocation9], 0 }
   0x3   :  { %14 = vsyncpa [#allocation14], 0  ;;  %s527_s15 = smov [#allocation7]   ;;  %s528_s17 = smov [#allocation10]  }
   0x4   :  { %s23_s16 = sshll.u32 %s527_s15, 4  ;;  %s32_s18 = sshll.u32 %s528_s17, 4  ;;  %s24_s16 = int_to_ptr.vmem [resolvable:$true] %s23_s16  ;;  %s33_s18 = int_to_ptr.vmem [resolvable:$true] %s32_s18 }
   0x5   :  { %s471_s19 = scalar_lea.vmem %s24_s16, 128  ;;  %p476_p1 = scmp.lt.s32.totalorder %s24_s16, %s24_s16 }
   0x6   :  { %p472_p0 = scmp.ne.s32.totalorder %s24_s16, %s471_s19  ;;  %p477_p2 = scmp.lt.s32.totalorder %s471_s19, %s471_s19 }
   0x8   :  { %p478_p3 = por %p477_p2, %p476_p1 }
   0xa   :  { %p479_p4 = pnand %p478_p3, %p472_p0 }
   0xc   :  { %482 = shalt.err (!%p479_p4)
}
   0xd   :  { %26 = dma.hbm_to_vmem [thread:$0]  %s616_s1, 128, %s24_s16, [#allocation8]  }
   0xe   :  { %s491_s22 = scalar_lea.vmem %s33_s18, 256  ;;  %p496_p6 = scmp.lt.s32.totalorder %s33_s18, %s33_s18 }
   0xf   :  { %p492_p5 = scmp.ne.s32.totalorder %s33_s18, %s491_s22  ;;  %p497_p7 = scmp.lt.s32.totalorder %s491_s22, %s491_s22 }
  0x11   :  { %p498_p8 = por %p497_p7, %p496_p6 }
  0x13   :  { %p499_p9 = pnand %p498_p8, %p492_p5 }
  0x15   :  { %502 = shalt.err (!%p499_p9)
}
  0x16   :  { %s529_s23 = smov 32   ;;  %s530_s24 = smov 2  }
  0x17   :  { %38 = dma.hbm_to_vmem [thread:$0]  %s617_s2, 256, %s33_s18, [#allocation11], %s529_s23, %s529_s23, %s530_s24  }
  0x18   :  { %519 = dma.done.wait [#allocation8], 128  }
  0x19   :  { %520 = vsyncadd [#allocation8], 4294967168 }
  0x1a   :  { %521 = dma.done.wait [#allocation11], 256  }
  0x1b   :  { %522 = vsyncadd [#allocation11], 4294967040  ;;  %vm73_vm0 = vcmask 1041408   ;;  %v65_v0 = vld [vmem:[#allocation10] sm:$0x3]  ;;  %vm155_vm1 = vcmask 1041409  }
  0x1c   :  { %v66_v1 = vld [vmem:[#allocation10 + $0x2] sm:$0x3]  ;;  %v67_v2 = vld [vmem:[#allocation10 + $0x4] sm:$0x3]  ;;  %v68_v3 = vld [vmem:[#allocation10 + $0x6] sm:$0x3] }
  0x1d   :  { %v69_v4 = vld [vmem:[#allocation10 + $0x8] sm:$0x3]  ;;  %v70_v5 = vld [vmem:[#allocation10 + $0xa] sm:$0x3]  ;;  %v71_v6 = vld [vmem:[#allocation10 + $0xc] sm:$0x3] }
  0x1e   :  { %v74_v7 = vsel %vm73_vm0, %v65_v0, 0.0  ;;  %v81_v8 = vsel %vm73_vm0, %v66_v1, 0.0  ;;  %v72_v9 = vld [vmem:[#allocation10 + $0xe] sm:$0x3]  ;;  %v88_v12 = vsel %vm73_vm0, %v67_v2, 0.0  ;;  %v95_v13 = vsel %vm73_vm0, %v68_v3, 0.0 }
  0x1f   :  { %v75_v10 = vrot.slane %v74_v7, 4  ;;  %v82_v11 = vrot.slane %v81_v8, 4  ;;  %v89_v14 = vrot.slane %v88_v12, 4  ;;  %v96_v15 = vrot.slane %v95_v13, 4  ;;  %s535_s28 = smov [#allocation12]   ;;  %s536_s7 = smov [#allocation13]  }
  0x20   :  { %v102_v16 = vsel %vm73_vm0, %v69_v4, 0.0  ;;  %v109_v17 = vsel %vm73_vm0, %v70_v5, 0.0  ;;  %v116_v24 = vsel %vm73_vm0, %v71_v6, 0.0  ;;  %v123_v25 = vsel %vm73_vm0, %v72_v9, 0.0 }
  0x21   :  { %v76_v18 = vadd.f32 %v75_v10, %v74_v7  ;;  %v83_v19 = vadd.f32 %v82_v11, %v81_v8  ;;  %v103_v20 = vrot.slane %v102_v16, 4  ;;  %v110_v21 = vrot.slane %v109_v17, 4 }
  0x22   :  { %v90_v22 = vadd.f32 %v89_v14, %v88_v12  ;;  %v97_v23 = vadd.f32 %v96_v15, %v95_v13  ;;  %v117_v32 = vrot.slane %v116_v24, 4  ;;  %v124_v33 = vrot.slane %v123_v25, 4 }
  0x23   :  { %v77_v26 = vrot.slane %v76_v18, 2  ;;  %v84_v27 = vrot.slane %v83_v19, 2  ;;  %v104_v28 = vadd.f32 %v103_v20, %v102_v16  ;;  %v111_v29 = vadd.f32 %v110_v21, %v109_v17  ;;  %v49_v21 = vld [vmem:[#allocation7] sm:$0xff] }
  0x24   :  { %v91_v30 = vrot.slane %v90_v22, 2  ;;  %v98_v31 = vrot.slane %v97_v23, 2  ;;  %vm157_vm2 = vcmask 1042434   ;;  %v118_v40 = vadd.f32 %v117_v32, %v116_v24 }
  0x25   :  { %v78_v34 = vadd.f32 %v77_v26, %v76_v18  ;;  %v85_v35 = vadd.f32 %v84_v27, %v83_v19  ;;  %v105_v36 = vrot.slane %v104_v28, 2  ;;  %v112_v37 = vrot.slane %v111_v29, 2 }
  0x26   :  { %v92_v38 = vadd.f32 %v91_v30, %v90_v22  ;;  %v99_v39 = vadd.f32 %v98_v31, %v97_v23  ;;  %v125_v41 = vadd.f32 %v124_v33, %v123_v25  ;;  %vm159_vm3 = vcmask 1043459  }
  0x27   :  { %v79_v42 = vrot.slane %v78_v34, 1  ;;  %v86_v43 = vrot.slane %v85_v35, 1  ;;  %v106_v44 = vadd.f32 %v105_v36, %v104_v28  ;;  %v113_v45 = vadd.f32 %v112_v37, %v111_v29 }
  0x28   :  { %v93_v46 = vrot.slane %v92_v38, 1  ;;  %v100_v47 = vrot.slane %v99_v39, 1  ;;  %v119_v48 = vrot.slane %v118_v40, 2  ;;  %v126_v49 = vrot.slane %v125_v41, 2 }
  0x29   :  { %v80_v50 = vadd.f32 %v79_v42, %v78_v34  ;;  %v87_v51 = vadd.f32 %v86_v43, %v85_v35  ;;  %v107_v52 = vrot.slane %v106_v44, 1  ;;  %v114_v53 = vrot.slane %v113_v45, 1 }
  0x2a   :  { %v94_v54 = vadd.f32 %v93_v46, %v92_v38  ;;  %v101_v55 = vadd.f32 %v100_v47, %v99_v39  ;;  %v120_v56 = vadd.f32 %v119_v48, %v118_v40  ;;  %v127_v57 = vadd.f32 %v126_v49, %v125_v41 }
  0x2b   :  { %v108_v58 = vadd.f32 %v107_v52, %v106_v44  ;;  %v115_v59 = vadd.f32 %v114_v53, %v113_v45  ;;  %v131_v60 = vmul.f32 0.5, %v80_v50  ;;  %v132_v61 = vmul.f32 0.5, %v87_v51 }
  0x2c   :  { %v121_v62 = vrot.slane %v120_v56, 1  ;;  %v128_v63 = vrot.slane %v127_v57, 1  ;;  %v133_v0 = vmul.f32 0.5, %v94_v54  ;;  %v134_v1 = vmul.f32 0.5, %v101_v55 }
  0x2d   :  { %v135_v2 = vmul.f32 0.5, %v108_v58  ;;  %v136_v3 = vmul.f32 0.5, %v115_v59  ;;  %v139_v4 = vmul.f32 %v131_v60, %v131_v60  ;;  %v140_v5 = vmul.f32 %v132_v61, %v132_v61 }
  0x2e   :  { %v122_v6 = vadd.f32 %v121_v62, %v120_v56  ;;  %v129_v7 = vadd.f32 %v128_v63, %v127_v57  ;;  %v141_v8 = vmul.f32 %v133_v0, %v133_v0  ;;  %v142_v9 = vmul.f32 %v134_v1, %v134_v1 }
  0x2f   :  { %v143_v10 = vmul.f32 %v135_v2, %v135_v2  ;;  %v144_v11 = vmul.f32 %v136_v3, %v136_v3  ;;  %v156_v12 = vsel %vm155_vm1, %v140_v5, %v139_v4  ;;  %vm161_vm4 = vcmask 1044484  }
  0x30   :  { %v137_v13 = vmul.f32 0.5, %v122_v6  ;;  %v138_v14 = vmul.f32 0.5, %v129_v7  ;;  %v158_v15 = vsel %vm157_vm2, %v141_v8, %v156_v12  ;;  %vm163_vm5 = vcmask 1045509  }
  0x31   :  { %v160_v16 = vsel %vm159_vm3, %v142_v9, %v158_v15  ;;  %vm165_vm6 = vcmask 1046534   ;;  %vm167_vm7 = vcmask 1047559   ;;  %v50_v24 = vmul.f32 %v49_v21, %v49_v21 }
  0x32   :  { %v145_v17 = vmul.f32 %v137_v13, %v137_v13  ;;  %v146_v18 = vmul.f32 %v138_v14, %v138_v14  ;;  %v162_v19 = vsel %vm161_vm4, %v143_v10, %v160_v16  ;;  %v531_v25 = vmov 0.0  }
  0x33   :  { %v164_v20 = vsel %vm163_vm5, %v144_v11, %v162_v19  ;;  %436 = vmatprep.subr.mxu0 %v531_v25  ;;  %vm532_vm8 = vmmov 0   ;;  %v56_v37 = vstv %s615_s0  ;;  %vm60_vm9 = vcmask 7168  }
  0x34   :  { %v166_v22 = vsel %vm165_vm6, %v145_v17, %v164_v20  ;;  %438 = vmatprep.mubr.msk.f32.mxu0 %vm532_vm8, %v531_v25  ;;  %vm303_vm11 = vcmask 64512   ;;  %v534_v15 = vmov 0   ;;  %vm339_vm0 = vcmask 57344  }
  0x35   :  { %v168_v23 = vsel %vm167_vm7, %v146_v18, %v166_v22  ;;  %62 = vst.msk [vmem:[#allocation4] sm:$0xff] %vm60_vm9, %v534_v15 }
  0x36   :  { %170 = vadd.xlane.f32.xlu0 %v168_v23 }
  0x3a   :  { %51 = vadd.xlane.f32.xlu0 %v50_v24 }
  0xbf   :  { %v171_v26 = vpop.xlane.xlu0 %170 }
  0xc0   :  { %v172_v27 = vmax.f32 %v171_v26, 1e-16 }
  0xc2   :  { %455 = vrsqrt.f32 %v172_v27 }
  0xc3   :  { %v52_v28 = vpop.xlane.xlu0 %51 }
  0xc4   :  { %v53_v29 = vmax.f32 %v52_v28, 1e-16 }
  0xc6   :  { %457 = vrsqrt.f32 %v53_v29 }
  0xcf   :  { %v456_v30 = vpop.eup %455 }
  0xd0   :  { %v175_v31 = vrot.slane %v456_v30, 1  ;;  %v176_v32 = vrot.slane %v456_v30, 2  ;;  %v177_v33 = vrot.slane %v456_v30, 3  ;;  %v178_v34 = vrot.slane %v456_v30, 4 }
  0xd1   :  { %v179_v35 = vrot.slane %v456_v30, 5  ;;  %v180_v36 = vrot.slane %v456_v30, 6  ;;  %v181_v38 = vrot.slane %v456_v30, 7  ;;  %v190_v44 = vmul.f32 %v456_v30, %v131_v60 }
  0xd2   :  { %v191_v39 = vmul.f32 %v175_v31, %v132_v61  ;;  %v192_v40 = vmul.f32 %v176_v32, %v133_v0  ;;  %v193_v41 = vmul.f32 %v177_v33, %v134_v1  ;;  %v194_v43 = vmul.f32 %v178_v34, %v135_v2 }
  0xd3   :  { %v458_v42 = vpop.eup %457  ;;  %v195_v45 = vmul.f32 %v179_v35, %v136_v3  ;;  %v196_v48 = vmul.f32 %v180_v36, %v137_v13  ;;  %v197_v50 = vmul.f32 %v181_v38, %v138_v14  ;;  %v533_v1 = vmov -inf  }
  0xd4   :  { %v207_v46 = vrot.slane %v191_v39, 7  ;;  %v209_v47 = vrot.slane %v192_v40, 6  ;;  %v57_v49 = vmul.f32 %v458_v42, %v56_v37  ;;  %v211_v52 = vrot.slane %v193_v41, 5  ;;  %61 = vst.msk [vmem:[#allocation3] sm:$0xff] %vm60_vm9, %v533_v1 }
  0xd5   :  { %v213_v54 = vrot.slane %v194_v43, 4  ;;  %v215_v56 = vrot.slane %v195_v45, 3  ;;  %v217_v58 = vrot.slane %v196_v48, 2  ;;  %v219_v61 = vrot.slane %v197_v50, 1 }
  0xd6   :  { %v208_v51 = vsel %vm155_vm1, %v207_v46, %v190_v44  ;;  %v58_v59 = vmul.f32 %v57_v49, %v49_v21  ;;  %v293_v2 = vlaneseq }
  0xd7   :  { %v210_v53 = vsel %vm157_vm2, %v209_v47, %v208_v51 }
  0xd8   :  { %v212_v55 = vsel %vm159_vm3, %v211_v52, %v210_v53  ;;  %v296_v3 = vand.u32 127, %v293_v2  ;;  %v294_v16 = vshrl.u32 %v293_v2, 7  ;;  %v379_v53 = vld [vmem:[#allocation4] sm:$0xff] }
  0xd9   :  { %v214_v57 = vsel %vm161_vm4, %v213_v54, %v212_v55 }
  0xda   :  { %v216_v60 = vsel %vm163_vm5, %v215_v56, %v214_v57  ;;  %vm329_vm10 = vcmp.lt.s32.totalorder %v296_v3, 8  ;;  %vm299_vm14 = vcmp.eq.s32.totalorder %v294_v16, %v296_v3  ;;  %v334_v40 = vsub.s32 %v296_v3, %v294_v16 }
  0xdb   :  { %v218_v62 = vsel %vm165_vm6, %v217_v58, %v216_v60  ;;  %v374_v8 = vld [vmem:[#allocation3] sm:$0xff] }
  0xdc   :  { %v220_v63 = vsel %vm167_vm7, %v219_v61, %v218_v62 }
  0xdd   :  { %437 = vmatpush3.xpose.msra.mxu0 %v220_v63  ;;  %v326_v0 = vmul.f32 %v220_v63, %v58_v59 }
  0xe0   :  { %439 = vmatmul.mubr.f32.vlgmr.msra.gmra.mxu0 %v58_v59 }
 0x1a0   :  { %v288_v4 = vpop.f32.mrf.mxu0 }
 0x1a1   :  { %v353_v5 = vsel %vm329_vm10, %v288_v4, -inf  ;;  %v302_v17 = vsel %vm299_vm14, -inf, %v288_v4 }
 0x1a2   :  { %v440_v6 = vpop.f32.mrf.mxu0  ;;  %v354_v7 = vsel %vm303_vm11, %v353_v5, -inf  ;;  %v304_v18 = vsel %vm303_vm11, %v302_v17, -inf }
 0x1a3   :  { %355 = vmax.xlane.f32.xlu1 %v354_v7  ;;  %v305_v19 = vrot.slane %v304_v18, 4 }
 0x1a5   :  { %v306_v20 = vmax.f32 %v304_v18, %v305_v19 }
 0x1a7   :  { %v307_v21 = vrot.slane %v306_v20, 2 }
 0x1a9   :  { %v308_v22 = vmax.f32 %v306_v20, %v307_v21 }
 0x1ab   :  { %v309_v23 = vrot.slane %v308_v22, 1 }
 0x1ad   :  { %v310_v24 = vmax.f32 %v308_v22, %v309_v23 }
 0x1af   :  { %v311_v26 = vsub.f32 %v302_v17, %v310_v24 }
 0x1b1   :  { %v312_v27 = vmul.f32 1.442695, %v311_v26 }
 0x1b3   :  { %459 = vpow2.f32 %v312_v27 }
 0x1c0   :  { %v460_v28 = vpop.eup %459 }
 0x1c1   :  { %v314_v29 = vsel %vm303_vm11, %v460_v28, 0.0 }
 0x1c2   :  { %v315_v30 = vrot.slane %v314_v29, 4 }
 0x1c4   :  { %v316_v31 = vadd.f32 %v315_v30, %v314_v29 }
 0x1c6   :  { %v317_v32 = vrot.slane %v316_v31, 2 }
 0x1c8   :  { %v318_v33 = vadd.f32 %v317_v32, %v316_v31 }
 0x1ca   :  { %v319_v34 = vrot.slane %v318_v33, 1 }
 0x1cc   :  { %v320_v35 = vadd.f32 %v319_v34, %v318_v33 }
 0x1ce   :  { %461 = vlog2.f32 %v320_v35 }
 0x1db   :  { %v462_v37 = vpop.eup %461 }
 0x1dc   :  { %v322_v41 = vmul.f32 0.6931472, %v462_v37 }
 0x1de   :  { %v323_v44 = vadd.f32 %v322_v41, %v310_v24 }
 0x22c   :  { %v356_v9 = vpop.xlane.xlu1 %355 }
 0x22d   :  { %vm357_vm12 = vcmp.ge.f32.partialorder %v353_v5, %v356_v9  ;;  %vm375_vm13 = vcmp.gt.f32.partialorder %v356_v9, %v374_v8 }
 0x22e   :  { %v376_v10 = vsel %vm375_vm13, %v356_v9, %v374_v8  ;;  %v358_v11 = vsel %vm357_vm12, %v296_v3, 1073741824 }
 0x22f   :  { %378 = vst.msk [vmem:[#allocation3] sm:$0xff] %vm60_vm9, %v376_v10  ;;  %v359_v12 = vsel %vm303_vm11, %v358_v11, 2147483647 }
 0x230   :  { %v361_v13 = vshra.s32 %v359_v12, 16  ;;  %v360_v36 = vand.u32 65535, %v359_v12 }
 0x232   :  { %v363_v14 = vcvt.s32.f32 %v361_v13  ;;  %v362_v39 = vcvt.s32.f32 %v360_v36 }
 0x234   :  { %364 = vmin.xlane.f32.xlu1 %v363_v14 }
 0x238   :  { %327 = vadd.xlane.f32.xlu1 %v326_v0 }
 0x2bd   :  { %v365_v38 = vpop.xlane.xlu1 %364 }
 0x2be   :  { %vm366_vm15 = vcmp.eq.f32.partialorder %v363_v14, %v365_v38  ;;  %v371_v49 = vcvt.f32.s32 %v365_v38 }
 0x2bf   :  { %v367_v42 = vsel %vm366_vm15, %v362_v39, inf }
 0x2c0   :  { %368 = vmin.xlane.f32.xlu0 %v367_v42  ;;  %v372_v51 = vshll.u32 %v371_v49, 16 }
 0x2c1   :  { %v328_v43 = vpop.xlane.xlu1 %327 }
 0x2c2   :  { %v335_v45 = vrot.slane %v328_v43, %v334_v40 }
 0x2c4   :  { %v337_v46 = vsub.f32 %v323_v44, %v335_v45 }
 0x2c6   :  { %v338_v47 = vsel %vm329_vm10, %v337_v46, 0.0 }
 0x2c7   :  { %v340_v48 = vsel %vm339_vm0, %v338_v47, 0.0 }
 0x2c8   :  { %341 = vadd.xlane.f32.xlu0 %v340_v48 }
 0x349   :  { %v369_v50 = vpop.xlane.xlu0 %368 }
 0x34a   :  { %v370_v52 = vcvt.f32.s32 %v369_v50 }
 0x34c   :  { %v373_v54 = vadd.s32 %v372_v51, %v370_v52 }
 0x34e   :  { %v380_v55 = vsel %vm375_vm13, %v373_v54, %v379_v53 }
 0x34f   :  { %381 = vst.msk [vmem:[#allocation4] sm:$0xff] %vm60_vm9, %v380_v55 }
 0x351   :  { %v342_v56 = vpop.xlane.xlu0 %341 }
 0x352   :  { %v343_v57 = vrot.slane %v342_v56, 4 }
 0x354   :  { %v344_v58 = vadd.f32 %v343_v57, %v342_v56 }
 0x356   :  { %v345_v59 = vrot.slane %v344_v58, 2  ;;  %v389_v60 = vld [vmem:[#allocation4] sm:$0xff] }
 0x357   :  { %vm390_vm1 = vcmp.eq.s32.totalorder %v389_v60, %v294_v16 }
 0x358   :  { %v393_v61 = vsel %vm390_vm1, 1.0, %v531_v25  ;;  %v346_v62 = vadd.f32 %v345_v59, %v344_v58 }
 0x359   :  { %v394_v63 = vsel %vm60_vm9, %v393_v61, 0.0 }
 0x35a   :  { %395 = vadd.xlane.f32.xlu1 %v394_v63  ;;  %v347_v0 = vrot.slane %v346_v62, 1 }
 0x35c   :  { %v348_v1 = vadd.f32 %v347_v0, %v346_v62 }
 0x35e   :  { %441 = vpush %v348_v1 }
 0x38f   :  { %s442_s0 = spop %441 }
 0x390   :  { %s386_s27 = smul.f32 0.125, %s442_s0 }
 0x392   :  { %388 = sst [smem:[#allocation12]] %s386_s27 }
 0x393   :  { %414 = dma.smem_to_hbm %s535_s28, 16, %s618_s3, [#allocation9]  }
 0x3e3   :  { %v396_v2 = vpop.xlane.xlu1 %395 }
 0x3e4   :  { %v397_v3 = vrot.slane %v396_v2, 4 }
 0x3e6   :  { %v398_v4 = vadd.f32 %v397_v3, %v396_v2 }
 0x3e8   :  { %v399_v5 = vrot.slane %v398_v4, 2 }
 0x3ea   :  { %v400_v25 = vadd.f32 %v399_v5, %v398_v4 }
 0x3ec   :  { %v401_v6 = vrot.slane %v400_v25, 1 }
 0x3ee   :  { %v402_v7 = vadd.f32 %v401_v6, %v400_v25 }
 0x3f0   :  { %443 = vpush %v402_v7 }
 0x421   :  { %s444_s5 = spop %443 }
 0x422   :  { %s404_s6 = smul.f32 12.5, %s444_s5 }
 0x424   :  { %406 = sst [smem:[#allocation13]] %s404_s6 }
 0x425   :  { %422 = dma.smem_to_hbm %s536_s7, 16, %s619_s4, [#allocation14]  }
 0x426   :  { %523 = dma.done.wait [#allocation9], 16  }
 0x427   :  { %524 = vsyncadd [#allocation9], 4294967280 }
 0x428   :  { %525 = dma.done.wait [#allocation14], 16  }
 0x429   :  { %526 = vsyncadd [#allocation14], 4294967280 }
 0x42a   :  { %429 = sfence }
 0x42b   :  { %430 = vsyncpa [#allocation8], 1 }
 0x42c   :  { %431 = vsyncpa [#allocation11], 1 }
 0x42d   :  { %432 = vsyncpa [#allocation9], 1 }
 0x42e   :  { %433 = vsyncpa [#allocation14], 1 }

</bundles_post_ra>
